<compile_context>
chip_gen: v7x
topology: tpu7x:2x2x1
jax: 0.10.0
libtpu: 0.0.40
codegen_flags: <defaults>
</compile_context>

<pallas_src>
import jax
import jax.numpy as jnp
from jax.experimental import pallas as pl
from jax.experimental.pallas import tpu as pltpu


def _round_up(x, m):
    return ((x + m - 1) // m) * m


def _bimodal_kernel(xt_ref, xi_ref,
                    wt1_ref, bt1_ref, wt2_ref, bt2_ref,
                    wi1_ref, bi1_ref, wi2_ref, bi2_ref,
                    text_out_ref, imp_out_ref):
    """Fused (Linear -> ReLU -> Linear -> row-wise L2 norm) for both modalities.

    Matmuls run in bf16 on the MXU with f32 accumulation; bias / ReLU /
    normalize stay in f32 on the VPU.
    """

    def encode(x_ref, w1_ref, b1_ref, w2_ref, b2_ref, o_ref):
        # torch's .float() cast happens implicitly at load; operands are then
        # narrowed to bf16 for the MXU.
        x = x_ref[...].astype(jnp.bfloat16)
        h = jnp.dot(x, w1_ref[...], preferred_element_type=jnp.float32)
        h = jnp.maximum(h + b1_ref[...], 0.0)                 # bias + ReLU (f32)
        y = jnp.dot(h.astype(jnp.bfloat16), w2_ref[...],
                    preferred_element_type=jnp.float32)
        y = y + b2_ref[...]
        # F.normalize(p=2, dim=1): y / max(||y||, 1e-12) == y * rsqrt(max(||y||^2, 1e-24))
        sq = jnp.sum(y * y, axis=1, keepdims=True)
        inv = jax.lax.rsqrt(jnp.maximum(sq, 1e-24))
        o_ref[...] = (y * inv).astype(o_ref.dtype)

    encode(xt_ref, wt1_ref, bt1_ref, wt2_ref, bt2_ref, text_out_ref)
    encode(xi_ref, wi1_ref, bi1_ref, wi2_ref, bi2_ref, imp_out_ref)


def init_encoder_params(key, d_in, d_hidden, d_embed):
    """Deterministic 2-layer MLP encoder params at their TRUE shapes.

    Matmul weights are stored as bf16 (half the HBM/VMEM traffic, full-rate
    MXU); biases stay f32. No lane padding — block_shape == full dim is legal.
    """
    k1, k2, k3, k4 = jax.random.split(key, 4)
    w1 = (jax.random.normal(k1, (d_in, d_hidden), jnp.float32) * 0.05
          ).astype(jnp.bfloat16)
    b1 = jax.random.normal(k2, (1, d_hidden), jnp.float32) * 0.01
    w2 = (jax.random.normal(k3, (d_hidden, d_embed), jnp.float32) * 0.05
          ).astype(jnp.bfloat16)
    b2 = jax.random.normal(k4, (1, d_embed), jnp.float32) * 0.01
    return w1, b1, w2, b2


def _choose_tile_b(batch):
    """Shape-aware batch tile: sublane-aligned, >=2 tiles when possible
    (v7x megacore), capped at 512 rows for large batches."""
    b8 = _round_up(batch, 8)
    if b8 <= 8:
        return 8
    if b8 <= 2 * 512:
        return _round_up(-(-b8 // 2), 8)   # split into (at least) two tiles
    return 512


@jax.jit
def bimodal_forward(text_input, imp_input, text_params, imp_params):
    """Pallas implementation of BiModalModel.forward.

    Returns (text_output, imp_output), each L2-normalized along dim=1.
    """
    wt1, bt1, wt2, bt2 = text_params
    wi1, bi1, wi2, bi2 = imp_params

    B, dt = text_input.shape
    _, di = imp_input.shape
    h = wt1.shape[1]
    e_t = wt2.shape[1]
    e_i = wi2.shape[1]

    tile_b = _choose_tile_b(B)
    b_pad = _round_up(_round_up(B, 8), tile_b)
    grid_b = b_pad // tile_b

    xt, xi = text_input, imp_input
    if b_pad != B:
        # Pad only the batch axis; feature dims stay at their true widths.
        xt = jnp.pad(xt, ((0, b_pad - B), (0, 0)))
        xi = jnp.pad(xi, ((0, b_pad - B), (0, 0)))

    def batch_spec(d):
        return pl.BlockSpec((tile_b, d), lambda i: (i, 0))

    def resident_spec(shape):
        # Constant block index -> stays VMEM-resident across batch tiles.
        return pl.BlockSpec(shape, lambda i: (0, 0))

    weight_bytes = sum(int(p.size) * p.dtype.itemsize
                       for p in (wt1, bt1, wt2, bt2, wi1, bi1, wi2, bi2))
    stream_bytes = (tile_b * (dt + di) * text_input.dtype.itemsize
                    + tile_b * (e_t + e_i) * 4)
    # Double-buffered streams + (conservatively double-buffered) resident
    # weights + 1 MiB slack; clamp to [4 MiB, 64 MiB] (v7x physical ceiling).
    vmem_budget = 2 * stream_bytes + 2 * weight_bytes + (1 << 20)
    vmem_budget = int(min(max(vmem_budget, 4 << 20), 64 << 20))

    flops = 2 * b_pad * (dt * h + h * e_t + di * h + h * e_i)
    bytes_accessed = int(
        b_pad * (dt + di) * text_input.dtype.itemsize
        + weight_bytes
        + b_pad * (e_t + e_i) * 4)

    text_out, imp_out = pl.pallas_call(
        _bimodal_kernel,
        out_shape=(jax.ShapeDtypeStruct((b_pad, e_t), jnp.float32),
                   jax.ShapeDtypeStruct((b_pad, e_i), jnp.float32)),
        grid_spec=pltpu.PrefetchScalarGridSpec(
            num_scalar_prefetch=0,
            grid=(grid_b,),
            in_specs=[batch_spec(dt), batch_spec(di),
                      resident_spec(wt1.shape), resident_spec(bt1.shape),
                      resident_spec(wt2.shape), resident_spec(bt2.shape),
                      resident_spec(wi1.shape), resident_spec(bi1.shape),
                      resident_spec(wi2.shape), resident_spec(bi2.shape)],
            out_specs=[batch_spec(e_t), batch_spec(e_i)],
        ),
        compiler_params=pltpu.CompilerParams(
            dimension_semantics=("parallel",),   # v7x: both TCs split batch tiles
            vmem_limit_bytes=vmem_budget),
        cost_estimate=pl.CostEstimate(flops=flops, transcendentals=0,
                                      bytes_accessed=bytes_accessed),
    )(xt, xi, wt1, bt1, wt2, bt2, wi1, bi1, wi2, bi2)

    if b_pad != B:
        text_out = text_out[:B]
        imp_out = imp_out[:B]
    return text_out, imp_out


if __name__ == "__main__":
    # Small deterministic shapes.
    B = 8              # batch
    TEXT_DIM = 32      # text feature dim
    IMP_DIM = 48       # "impression" feature dim
    HIDDEN = 64
    EMBED_DIM = 32     # embedding_dim

    key = jax.random.PRNGKey(0)
    k_text_in, k_imp_in, k_text_p, k_imp_p = jax.random.split(key, 4)

    text_input = jax.random.normal(k_text_in, (B, TEXT_DIM), jnp.float32)
    imp_input = jax.random.normal(k_imp_in, (B, IMP_DIM), jnp.float32)

    text_params = init_encoder_params(k_text_p, TEXT_DIM, HIDDEN, EMBED_DIM)
    imp_params = init_encoder_params(k_imp_p, IMP_DIM, HIDDEN, EMBED_DIM)

    text_out, imp_out = bimodal_forward(text_input, imp_input,
                                        text_params, imp_params)
    jax.block_until_ready((text_out, imp_out))

    assert text_out.shape == (B, EMBED_DIM)
    assert imp_out.shape == (B, EMBED_DIM)
    assert bool(jnp.all(jnp.isfinite(text_out)))
    assert bool(jnp.all(jnp.isfinite(imp_out)))

    # Rows should be unit-norm (up to fp error).
    tn = jnp.linalg.norm(text_out, axis=1)
    inn = jnp.linalg.norm(imp_out, axis=1)
    assert bool(jnp.all(jnp.abs(tn - 1.0) < 1e-3))
    assert bool(jnp.all(jnp.abs(inn - 1.0) < 1e-3))

    # Cross-check against a pure-JAX f32 reference (bf16 matmuls loosen tol).
    def ref_encode(x, params):
        w1, b1, w2, b2 = params
        y = jnp.maximum(x @ w1.astype(jnp.float32) + b1, 0.0) @ \
            w2.astype(jnp.float32) + b2
        n = jnp.maximum(jnp.linalg.norm(y, axis=1, keepdims=True), 1e-12)
        return y / n

    ref_t = ref_encode(text_input, text_params)
    ref_i = ref_encode(imp_input, imp_params)
    assert bool(jnp.max(jnp.abs(text_out - ref_t)) < 5e-2)
    assert bool(jnp.max(jnp.abs(imp_out - ref_i)) < 5e-2)

    print("KERNEL_OK")
</pallas_src>

<mosaic_0001>
module attributes {stable_mosaic.version = 11 : i64} {
  func.func @_bimodal_kernel(%arg0: i32, %arg1: memref<8x32xf32, #tpu.memory_space<vmem>>, %arg2: memref<8x48xf32, #tpu.memory_space<vmem>>, %arg3: memref<32x64xbf16, #tpu.memory_space<vmem>>, %arg4: memref<1x64xf32, #tpu.memory_space<vmem>>, %arg5: memref<64x32xbf16, #tpu.memory_space<vmem>>, %arg6: memref<1x32xf32, #tpu.memory_space<vmem>>, %arg7: memref<48x64xbf16, #tpu.memory_space<vmem>>, %arg8: memref<1x64xf32, #tpu.memory_space<vmem>>, %arg9: memref<64x32xbf16, #tpu.memory_space<vmem>>, %arg10: memref<1x32xf32, #tpu.memory_space<vmem>>, %arg11: memref<8x32xf32, #tpu.memory_space<vmem>>, %arg12: memref<8x32xf32, #tpu.memory_space<vmem>>) attributes {dimension_semantics = [#tpu.dimension_semantics<parallel>], iteration_bounds = array<i64: 1>, scalar_prefetch = 0 : i64, scratch_operands = 0 : i64, tpu.core_type = #tpu.core_type<tc>, window_params = [{transform_indices = @transform_0, window_bounds = array<i64: 8, 32>}, {transform_indices = @transform_1, window_bounds = array<i64: 8, 48>}, {pipeline_mode = #tpu.pipeline_mode<synchronous>, transform_indices = @transform_2, window_bounds = array<i64: 32, 64>}, {pipeline_mode = #tpu.pipeline_mode<synchronous>, transform_indices = @transform_3, window_bounds = array<i64: 1, 64>}, {pipeline_mode = #tpu.pipeline_mode<synchronous>, transform_indices = @transform_4, window_bounds = array<i64: 64, 32>}, {pipeline_mode = #tpu.pipeline_mode<synchronous>, transform_indices = @transform_5, window_bounds = array<i64: 1, 32>}, {pipeline_mode = #tpu.pipeline_mode<synchronous>, transform_indices = @transform_6, window_bounds = array<i64: 48, 64>}, {pipeline_mode = #tpu.pipeline_mode<synchronous>, transform_indices = @transform_7, window_bounds = array<i64: 1, 64>}, {pipeline_mode = #tpu.pipeline_mode<synchronous>, transform_indices = @transform_8, window_bounds = array<i64: 64, 32>}, {pipeline_mode = #tpu.pipeline_mode<synchronous>, transform_indices = @transform_9, window_bounds = array<i64: 1, 32>}, {transform_indices = @transform_10, window_bounds = array<i64: 8, 32>}, {transform_indices = @transform_11, window_bounds = array<i64: 8, 32>}]} {
    %c0 = arith.constant 0 : index
    %c0_0 = arith.constant 0 : index
    %0 = vector.load %arg1[%c0, %c0_0] : memref<8x32xf32, #tpu.memory_space<vmem>>, vector<8x32xf32>
    %1 = arith.truncf %0 : vector<8x32xf32> to vector<8x32xbf16>
    %c0_1 = arith.constant 0 : index
    %c0_2 = arith.constant 0 : index
    %2 = vector.load %arg3[%c0_1, %c0_2] : memref<32x64xbf16, #tpu.memory_space<vmem>>, vector<32x64xbf16>
    %cst = arith.constant dense<0.000000e+00> : vector<8x64xf32>
    %3 = tpu.matmul %1, %2, %cst {dimension_numbers = #tpu.dot_dimension_numbers<[1], [0], [0], [1], [0, 0, 1, 1], [], []>} : vector<8x32xbf16>, vector<32x64xbf16>, vector<8x64xf32> -> vector<8x64xf32>
    %c0_3 = arith.constant 0 : index
    %c0_4 = arith.constant 0 : index
    %4 = vector.load %arg4[%c0_3, %c0_4] : memref<1x64xf32, #tpu.memory_space<vmem>>, vector<1x64xf32>
    %5 = vector.broadcast %4 : vector<1x64xf32> to vector<8x64xf32>
    %6 = arith.addf %3, %5 : vector<8x64xf32>
    %cst_5 = arith.constant 0.000000e+00 : f32
    %7 = vector.broadcast %cst_5 : f32 to vector<8x64xf32>
    %8 = arith.maximumf %6, %7 : vector<8x64xf32>
    %9 = arith.truncf %8 : vector<8x64xf32> to vector<8x64xbf16>
    %c0_6 = arith.constant 0 : index
    %c0_7 = arith.constant 0 : index
    %10 = vector.load %arg5[%c0_6, %c0_7] : memref<64x32xbf16, #tpu.memory_space<vmem>>, vector<64x32xbf16>
    %cst_8 = arith.constant dense<0.000000e+00> : vector<8x32xf32>
    %11 = tpu.matmul %9, %10, %cst_8 {dimension_numbers = #tpu.dot_dimension_numbers<[1], [0], [0], [1], [0, 0, 1, 1], [], []>} : vector<8x64xbf16>, vector<64x32xbf16>, vector<8x32xf32> -> vector<8x32xf32>
    %c0_9 = arith.constant 0 : index
    %c0_10 = arith.constant 0 : index
    %12 = vector.load %arg6[%c0_9, %c0_10] : memref<1x32xf32, #tpu.memory_space<vmem>>, vector<1x32xf32>
    %13 = vector.broadcast %12 : vector<1x32xf32> to vector<8x32xf32>
    %14 = arith.addf %11, %13 : vector<8x32xf32>
    %15 = arith.mulf %14, %14 : vector<8x32xf32>
    %cst_11 = arith.constant dense<0.000000e+00> : vector<8xf32>
    %16 = vector.multi_reduction <add>, %15, %cst_11 [1] : vector<8x32xf32> to vector<8xf32>
    %17 = vector.shape_cast %16 : vector<8xf32> to vector<8x1xf32>
    %cst_12 = arith.constant 1.000000e-24 : f32
    %18 = vector.broadcast %cst_12 : f32 to vector<8x1xf32>
    %19 = arith.maximumf %17, %18 : vector<8x1xf32>
    %20 = math.rsqrt %19 : vector<8x1xf32>
    %21 = vector.broadcast %20 : vector<8x1xf32> to vector<8x32xf32>
    %22 = arith.mulf %14, %21 : vector<8x32xf32>
    %c0_13 = arith.constant 0 : index
    %c0_14 = arith.constant 0 : index
    %23 = vector.load %arg11[%c0_13, %c0_14] : memref<8x32xf32, #tpu.memory_space<vmem>>, vector<8x32xf32>
    tpu.vector_store %arg11[%c0_13, %c0_14], %22 {strides = array<i32>} : memref<8x32xf32, #tpu.memory_space<vmem>>, vector<8x32xf32>,
    %c0_15 = arith.constant 0 : index
    %c0_16 = arith.constant 0 : index
    %24 = vector.load %arg2[%c0_15, %c0_16] : memref<8x48xf32, #tpu.memory_space<vmem>>, vector<8x48xf32>
    %25 = arith.truncf %24 : vector<8x48xf32> to vector<8x48xbf16>
    %c0_17 = arith.constant 0 : index
    %c0_18 = arith.constant 0 : index
    %26 = vector.load %arg7[%c0_17, %c0_18] : memref<48x64xbf16, #tpu.memory_space<vmem>>, vector<48x64xbf16>
    %cst_19 = arith.constant dense<0.000000e+00> : vector<8x64xf32>
    %27 = tpu.matmul %25, %26, %cst_19 {dimension_numbers = #tpu.dot_dimension_numbers<[1], [0], [0], [1], [0, 0, 1, 1], [], []>} : vector<8x48xbf16>, vector<48x64xbf16>, vector<8x64xf32> -> vector<8x64xf32>
    %c0_20 = arith.constant 0 : index
    %c0_21 = arith.constant 0 : index
    %28 = vector.load %arg8[%c0_20, %c0_21] : memref<1x64xf32, #tpu.memory_space<vmem>>, vector<1x64xf32>
    %29 = vector.broadcast %28 : vector<1x64xf32> to vector<8x64xf32>
    %30 = arith.addf %27, %29 : vector<8x64xf32>
    %cst_22 = arith.constant 0.000000e+00 : f32
    %31 = vector.broadcast %cst_22 : f32 to vector<8x64xf32>
    %32 = arith.maximumf %30, %31 : vector<8x64xf32>
    %33 = arith.truncf %32 : vector<8x64xf32> to vector<8x64xbf16>
    %c0_23 = arith.constant 0 : index
    %c0_24 = arith.constant 0 : index
    %34 = vector.load %arg9[%c0_23, %c0_24] : memref<64x32xbf16, #tpu.memory_space<vmem>>, vector<64x32xbf16>
    %cst_25 = arith.constant dense<0.000000e+00> : vector<8x32xf32>
    %35 = tpu.matmul %33, %34, %cst_25 {dimension_numbers = #tpu.dot_dimension_numbers<[1], [0], [0], [1], [0, 0, 1, 1], [], []>} : vector<8x64xbf16>, vector<64x32xbf16>, vector<8x32xf32> -> vector<8x32xf32>
    %c0_26 = arith.constant 0 : index
    %c0_27 = arith.constant 0 : index
    %36 = vector.load %arg10[%c0_26, %c0_27] : memref<1x32xf32, #tpu.memory_space<vmem>>, vector<1x32xf32>
    %37 = vector.broadcast %36 : vector<1x32xf32> to vector<8x32xf32>
    %38 = arith.addf %35, %37 : vector<8x32xf32>
    %39 = arith.mulf %38, %38 : vector<8x32xf32>
    %cst_28 = arith.constant dense<0.000000e+00> : vector<8xf32>
    %40 = vector.multi_reduction <add>, %39, %cst_28 [1] : vector<8x32xf32> to vector<8xf32>
    %41 = vector.shape_cast %40 : vector<8xf32> to vector<8x1xf32>
    %cst_29 = arith.constant 1.000000e-24 : f32
    %42 = vector.broadcast %cst_29 : f32 to vector<8x1xf32>
    %43 = arith.maximumf %41, %42 : vector<8x1xf32>
    %44 = math.rsqrt %43 : vector<8x1xf32>
    %45 = vector.broadcast %44 : vector<8x1xf32> to vector<8x32xf32>
    %46 = arith.mulf %38, %45 : vector<8x32xf32>
    %c0_30 = arith.constant 0 : index
    %c0_31 = arith.constant 0 : index
    %47 = vector.load %arg12[%c0_30, %c0_31] : memref<8x32xf32, #tpu.memory_space<vmem>>, vector<8x32xf32>
    tpu.vector_store %arg12[%c0_30, %c0_31], %46 {strides = array<i32>} : memref<8x32xf32, #tpu.memory_space<vmem>>, vector<8x32xf32>,
    return
  }
  func.func @transform_0(%arg0: i32) -> (i32, i32) {
    %c0_i32 = arith.constant 0 : i32
    %c0_i32_0 = arith.constant 0 : i32
    return %arg0, %c0_i32 : i32, i32
  }
  func.func @transform_1(%arg0: i32) -> (i32, i32) {
    %c0_i32 = arith.constant 0 : i32
    %c0_i32_0 = arith.constant 0 : i32
    return %arg0, %c0_i32 : i32, i32
  }
  func.func @transform_2(%arg0: i32) -> (i32, i32) {
    %c0_i32 = arith.constant 0 : i32
    %c0_i32_0 = arith.constant 0 : i32
    %c0_i32_1 = arith.constant 0 : i32
    return %c0_i32, %c0_i32_0 : i32, i32
  }
  func.func @transform_3(%arg0: i32) -> (i32, i32) {
    %c0_i32 = arith.constant 0 : i32
    %c0_i32_0 = arith.constant 0 : i32
    %c0_i32_1 = arith.constant 0 : i32
    return %c0_i32, %c0_i32_0 : i32, i32
  }
  func.func @transform_4(%arg0: i32) -> (i32, i32) {
    %c0_i32 = arith.constant 0 : i32
    %c0_i32_0 = arith.constant 0 : i32
    %c0_i32_1 = arith.constant 0 : i32
    return %c0_i32, %c0_i32_0 : i32, i32
  }
  func.func @transform_5(%arg0: i32) -> (i32, i32) {
    %c0_i32 = arith.constant 0 : i32
    %c0_i32_0 = arith.constant 0 : i32
    %c0_i32_1 = arith.constant 0 : i32
    return %c0_i32, %c0_i32_0 : i32, i32
  }
  func.func @transform_6(%arg0: i32) -> (i32, i32) {
    %c0_i32 = arith.constant 0 : i32
    %c0_i32_0 = arith.constant 0 : i32
    %c0_i32_1 = arith.constant 0 : i32
    return %c0_i32, %c0_i32_0 : i32, i32
  }
  func.func @transform_7(%arg0: i32) -> (i32, i32) {
    %c0_i32 = arith.constant 0 : i32
    %c0_i32_0 = arith.constant 0 : i32
    %c0_i32_1 = arith.constant 0 : i32
    return %c0_i32, %c0_i32_0 : i32, i32
  }
  func.func @transform_8(%arg0: i32) -> (i32, i32) {
    %c0_i32 = arith.constant 0 : i32
    %c0_i32_0 = arith.constant 0 : i32
    %c0_i32_1 = arith.constant 0 : i32
    return %c0_i32, %c0_i32_0 : i32, i32
  }
  func.func @transform_9(%arg0: i32) -> (i32, i32) {
    %c0_i32 = arith.constant 0 : i32
    %c0_i32_0 = arith.constant 0 : i32
    %c0_i32_1 = arith.constant 0 : i32
    return %c0_i32, %c0_i32_0 : i32, i32
  }
  func.func @transform_10(%arg0: i32) -> (i32, i32) {
    %c0_i32 = arith.constant 0 : i32
    %c0_i32_0 = arith.constant 0 : i32
    return %arg0, %c0_i32 : i32, i32
  }
  func.func @transform_11(%arg0: i32) -> (i32, i32) {
    %c0_i32 = arith.constant 0 : i32
    %c0_i32_0 = arith.constant 0 : i32
    return %arg0, %c0_i32 : i32, i32
  }
}

</mosaic_0001>

<bundles_post_ra>
// kernel: bimodal_forward.1
= control target key start
LH: loop header
LB: loop body
LE: loop exit
PB: predicated region body
PF: predicated region fallthrough
CT: control target
= control target key end

     0   :  { %17 = vsyncpa [#allocation3], 0  ;;  %v548_v1 = vmov 0.0   ;;  %vm549_vm0 = vmmov 0   ;;  %vm65_vm1 = vcmask 261120   ;;  %s721_s0 = inlined_call_operand.vmem [shape: f32[8,32], index: 0, kind: input, shape index: {}]   ;;  %s722_s1 = inlined_call_operand.vmem [shape: f32[8,48], index: 1, kind: input, shape index: {}]   ;;  %s723_s2 = inlined_call_operand.vmem [shape: bf16[32,64], index: 2, kind: input, shape index: {}]   ;;  %s724_s3 = inlined_call_operand.vmem [shape: f32[1,64], index: 3, kind: input, shape index: {}]   ;;  %s725_s4 = inlined_call_operand.vmem [shape: bf16[64,32], index: 4, kind: input, shape index: {}]   ;;  %s726_s5 = inlined_call_operand.vmem [shape: f32[1,32], index: 5, kind: input, shape index: {}]   ;;  %s727_s6 = inlined_call_operand.vmem [shape: bf16[48,64], index: 6, kind: input, shape index: {}]   ;;  %s728_s7 = inlined_call_operand.vmem [shape: f32[1,64], index: 7, kind: input, shape index: {}]   ;;  %s729_s8 = inlined_call_operand.vmem [shape: bf16[64,32], index: 8, kind: input, shape index: {}]   ;;  %s730_s9 = inlined_call_operand.vmem [shape: f32[1,32], index: 9, kind: input, shape index: {}]   ;;  %s731_s10 = inlined_call_operand.hbm [shape: f32[8,32], index: 10, kind: output, shape index: {0}]   ;;  %s732_s11 = inlined_call_operand.hbm [shape: f32[8,32], index: 11, kind: output, shape index: {1}]  }
   0x1   :  { %v483_v0 = vld [vmem:[%s723_s2] sm:$0xff]   ;;  %437 = vmatprep.subr.bf16.mxu0 %v548_v1  ;;  %v484_v2 = vld [vmem:[%s723_s2 + $0x8] sm:$0xff]   ;;  %445 = vmatprep.subr.bf16.mxu1 %v548_v1  ;;  %v490_v9 = vld [vmem:[%s725_s4 + $0x10] sm:$0xff]  }
   0x2   :  { %438 = vmatpush3.bf16.msra.mxu0 %v483_v0  ;;  %441 = vmatprep.mubr.msk.bf16.mxu0 %vm549_vm0, %v548_v1  ;;  %v40_v3 = vld [vmem:[%s721_s0] sm:$0xff]  ;;  %v486_v7 = vld [vmem:[%s727_s6 + $0x8] sm:$0xff]  }
   0x3   :  { %439 = vmatprep.subr.bf16.mxu0 %v548_v1  ;;  %453 = vmatprep.mubr.msk.bf16.mxu1 %vm549_vm0, %v548_v1  ;;  %v41_v4 = vpack.c.bf16 %v40_v3, %v40_v3  ;;  %v485_v5 = vld [vmem:[%s727_s6] sm:$0xff]   ;;  %v489_v8 = vld [vmem:[%s725_s4 + $0x8] sm:$0xff]  }
   0x4   :  { %v488_v6 = vld [vmem:[%s725_s4] sm:$0xff]  }
   0x5   :  { %446 = vmatpush3.bf16.msra.mxu1 %v488_v6 }
   0x6   :  { %440 = vmatpush3.bf16.msra.mxu0 %v484_v2  ;;  %447 = vmatprep.subr.bf16.mxu1 %v548_v1 }
   0x7   :  { %457 = vmatprep.subr.bf16.mxu0 %v548_v1 }
   0x9   :  { %442 = vmatmul.mubr.msk.bf16.vlgmr.msra.gmra.mrb[0].mxu0 %vm65_vm1, %v41_v4  ;;  %448 = vmatpush3.bf16.msra.mxu1 %v489_v8 }
   0xa   :  { %458 = vmatpush3.bf16.msra.mxu0 %v485_v5  ;;  %463 = vmatprep.mubr.msk.bf16.mxu0 %vm549_vm0, %v548_v1 }
   0xb   :  { %459 = vmatprep.subr.bf16.mxu0 %v548_v1 }
   0xc   :  { %18 = vsyncpa [#allocation5], 0  ;;  %449 = vmatprep.subr.bf16.mxu1 %v548_v1  ;;  %v487_v10 = vld [vmem:[%s727_s6 + $0x10] sm:$0xff]   ;;  %v202_v11 = vld [vmem:[%s722_s1] sm:$0xff]  ;;  %vm235_vm2 = vcmask 392192   ;;  %vm150_vm3 = vcmask 523264  }
   0xd   :  { %450 = vmatpush3.bf16.msra.mxu1 %v490_v9  ;;  %v203_v12 = vpack.c.bf16 %v202_v11, %v202_v11  ;;  %v491_v13 = vld [vmem:[%s725_s4 + $0x18] sm:$0xff]   ;;  %v399_v14 = vld [vmem:[%s724_s3] ss:$0 sm:$0xff]  ;;  %v493_v23 = vld [vmem:[%s729_s8 + $0x8] sm:$0xff]  }
   0xe   :  { %460 = vmatpush3.bf16.msra.mxu0 %v486_v7  ;;  %451 = vmatprep.subr.bf16.mxu1 %v548_v1  ;;  %v492_v21 = vld [vmem:[%s729_s8] sm:$0xff]   ;;  %v494_v26 = vld [vmem:[%s729_s8 + $0x10] sm:$0xff]   ;;  %v495_v32 = vld [vmem:[%s729_s8 + $0x18] sm:$0xff]  }
   0xf   :  { %461 = vmatprep.subr.bf16.mxu0 %v548_v1  ;;  %v409_v24 = vld [vmem:[%s728_s7] ss:$0 sm:$0xff] }
  0x10   :  { %v403_v34 = vld [vmem:[%s726_s5] ss:$0 sm:$0xff]  ;;  %s550_s5 = smov [#allocation2]  }
  0x11   :  { %452 = vmatpush3.bf16.msra.mxu1 %v491_v13  ;;  %v414_v42 = vld [vmem:[%s730_s9] ss:$0 sm:$0xff]  ;;  %s377_s0 = sshll.u32 %s550_s5, 4  ;;  %s378_s0 = int_to_ptr.vmem [resolvable:$true] %s377_s0 }
  0x12   :  { %462 = vmatpush3.bf16.msra.mxu0 %v487_v10  ;;  %467 = vmatprep.subr.bf16.mxu1 %v548_v1  ;;  %s500_s9 = scalar_lea.vmem %s378_s0, 128  ;;  %p505_p1 = scmp.lt.s32.totalorder %s378_s0, %s378_s0 }
  0x13   :  { %p501_p0 = scmp.ne.s32.totalorder %s378_s0, %s500_s9  ;;  %p506_p2 = scmp.lt.s32.totalorder %s500_s9, %s500_s9 }
  0x15   :  { %464 = vmatmul.mubr.msk.bf16.vlgmr.msra.gmra.mrb[4].mxu0 %vm235_vm2, %v203_v12  ;;  %p507_p3 = por %p506_p2, %p505_p1 }
  0x17   :  { %p508_p4 = pnand %p507_p3, %p501_p0 }
  0xdc   :  { %v103_v15 = vpop.f32.mrb[0].mxu0 }
  0xdd   :  { %v104_v16 = vadd.f32 %v399_v14, %v103_v15  ;;  %v443_v17 = vpop.f32.mrb[1].mxu0 }
  0xde   :  { %v106_v18 = vpop.f32.mrb[2].mxu0 }
  0xdf   :  { %v109_v19 = vmax.f32 %v104_v16, 0.0  ;;  %v444_v20 = vpop.f32.mrb[3].mxu0 }
  0xe1   :  { %v110_v22 = vpack.c.bf16 %v109_v19, %v109_v19 }
  0xe3   :  { %454 = vmatmul.mubr.msk.bf16.vlgmr.msra.gmra.mrb[0].mxu1 %vm150_vm3, %v110_v22 }
  0xe4   :  { %468 = vmatpush3.bf16.msra.mxu1 %v492_v21  ;;  %475 = vmatprep.mubr.msk.bf16.mxu1 %vm549_vm0, %v548_v1 }
  0xe5   :  { %469 = vmatprep.subr.bf16.mxu1 %v548_v1 }
  0xe8   :  { %470 = vmatpush3.bf16.msra.mxu1 %v493_v23  ;;  %v273_v25 = vpop.f32.mrb[4].mxu0 }
  0xe9   :  { %v274_v27 = vadd.f32 %v409_v24, %v273_v25  ;;  %v465_v28 = vpop.f32.mrb[5].mxu0  ;;  %471 = vmatprep.subr.bf16.mxu1 %v548_v1 }
  0xea   :  { %v276_v29 = vpop.f32.mrb[6].mxu0 }
  0xeb   :  { %v279_v30 = vmax.f32 %v274_v27, 0.0  ;;  %v466_v31 = vpop.f32.mrb[7].mxu0 }
  0xec   :  { %472 = vmatpush3.bf16.msra.mxu1 %v494_v26 }
  0xed   :  { %473 = vmatprep.subr.bf16.mxu1 %v548_v1  ;;  %v280_v33 = vpack.c.bf16 %v279_v30, %v279_v30 }
  0xf0   :  { %474 = vmatpush3.bf16.msra.mxu1 %v495_v32 }
  0xf3   :  { %476 = vmatmul.mubr.msk.bf16.vlgmr.msra.gmra.mrb[4].mxu1 %vm150_vm3, %v280_v33 }
 0x1b6   :  { %v188_v35 = vpop.f32.mrb[0].mxu1 }
 0x1b7   :  { %v189_v36 = vadd.f32 %v403_v34, %v188_v35  ;;  %v455_v37 = vpop.f32.mrb[1].mxu1 }
 0x1b8   :  { %v191_v38 = vpop.f32.mrb[2].mxu1 }
 0x1b9   :  { %v456_v39 = vpop.f32.mrb[3].mxu1  ;;  %v194_v40 = vmul.f32 %v189_v36, %v189_v36 }
 0x1bb   :  { %v195_v41 = vsel %vm65_vm1, %v194_v40, 0.0 }
 0x1bc   :  { %196 = vadd.xlane.f32.xlu0 %v195_v41 }
 0x1c6   :  { %v357_v43 = vpop.f32.mrb[4].mxu1 }
 0x1c7   :  { %v358_v44 = vadd.f32 %v414_v42, %v357_v43  ;;  %v477_v45 = vpop.f32.mrb[5].mxu1 }
 0x1c8   :  { %v360_v46 = vpop.f32.mrb[6].mxu1 }
 0x1c9   :  { %v478_v47 = vpop.f32.mrb[7].mxu1  ;;  %v363_v48 = vmul.f32 %v358_v44, %v358_v44 }
 0x1cb   :  { %v364_v49 = vsel %vm65_vm1, %v363_v48, 0.0 }
 0x1cc   :  { %365 = vadd.xlane.f32.xlu0 %v364_v49 }
 0x249   :  { %v197_v50 = vpop.xlane.xlu0 %196 }
 0x24a   :  { %v198_v51 = vmax.f32 %v197_v50, 1e-24 }
 0x24c   :  { %496 = vrsqrt.f32 %v198_v51 }
 0x256   :  { %v497_v52 = vpop.eup %496 }
 0x257   :  { %v200_v53 = vmul.f32 %v497_v52, %v189_v36 }
 0x259   :  { %v366_v54 = vpop.xlane.xlu0 %365  ;;  %201 = vst.msk [vmem:[#allocation2] sm:$0xff] %vm65_vm1, %v200_v53 }
 0x25a   :  { %v367_v55 = vmax.f32 %v366_v54, 1e-24 }
 0x25b   :  { %511 = shalt.err (!%p508_p4)
}
 0x25c   :  { %s512_s29 = scalar_lea.hbm %s731_s10, 128 }
 0x25d   :  { %p513_p5 = scmp.ne.s32.totalorder %s731_s10, %s512_s29  ;;  %p516_p6 = scmp.lt.u32.totalorder %s512_s29, %s731_s10 }
 0x25f   :  { %p518_p7 = pnand %p516_p6, %p513_p5 }
 0x261   :  { %521 = shalt.err (!%p518_p7)
}
 0x262   :  { %380 = dma.vmem_to_hbm [thread:$0]  %s378_s0, 128, %s731_s10, [#allocation3]   ;;  %498 = vrsqrt.f32 %v367_v55 }
 0x263   :  { %s551_s17 = smov [#allocation4]  }
 0x264   :  { %s387_s6 = sshll.u32 %s551_s17, 4  ;;  %s388_s6 = int_to_ptr.vmem [resolvable:$true] %s387_s6 }
 0x265   :  { %s522_s18 = scalar_lea.vmem %s388_s6, 128  ;;  %p527_p9 = scmp.lt.s32.totalorder %s388_s6, %s388_s6 }
 0x266   :  { %p523_p8 = scmp.ne.s32.totalorder %s388_s6, %s522_s18  ;;  %p528_p10 = scmp.lt.s32.totalorder %s522_s18, %s522_s18 }
 0x268   :  { %p529_p11 = por %p528_p10, %p527_p9 }
 0x26a   :  { %p530_p12 = pnand %p529_p11, %p523_p8 }
 0x26c   :  { %v499_v56 = vpop.eup %498 }
 0x26d   :  { %v369_v57 = vmul.f32 %v499_v56, %v358_v44 }
 0x26f   :  { %370 = vst.msk [vmem:[#allocation4] sm:$0xff] %vm65_vm1, %v369_v57 }
 0x270   :  { %533 = shalt.err (!%p530_p12)
}
 0x271   :  { %s534_s4 = scalar_lea.hbm %s732_s11, 128 }
 0x272   :  { %p535_p13 = scmp.ne.s32.totalorder %s732_s11, %s534_s4  ;;  %p538_p0 = scmp.lt.u32.totalorder %s534_s4, %s732_s11 }
 0x274   :  { %p540_p1 = pnand %p538_p0, %p535_p13 }
 0x276   :  { %543 = shalt.err (!%p540_p1)
}
 0x277   :  { %390 = dma.vmem_to_hbm [thread:$0]  %s388_s6, 128, %s732_s11, [#allocation5]  }
 0x278   :  { %544 = dma.done.wait [#allocation3], 128  }
 0x279   :  { %545 = vsyncadd [#allocation3], 4294967168 }
 0x27a   :  { %546 = dma.done.wait [#allocation5], 128  }
 0x27b   :  { %547 = vsyncadd [#allocation5], 4294967168 }
 0x27c   :  { %397 = vsyncpa [#allocation3], 1 }
 0x27d   :  { %398 = vsyncpa [#allocation5], 1 }

</bundles_post_ra>
